<compile_context>
chip_gen: v7x
topology: tpu7x:2x2x1
jax: 0.10.0
libtpu: 0.0.40
codegen_flags: <defaults>
</compile_context>

<pallas_src>
import functools
import math

import jax
import jax.numpy as jnp
from jax import lax
from jax.experimental import pallas as pl
from jax.experimental.pallas import tpu as pltpu

EPS = 1e-5  # nn.LayerNorm default


def _round_up(x, m):
    return (x + m - 1) // m * m


def _layernorm_kernel(x_ref, g_ref, b_ref, *rest, d, groups):
    """LayerNorm over aligned `d`-lane segments.

    x_ref: (row_tile, width) with width = groups * d; each VMEM row packs
           `groups` independent LayerNorm rows of length d side by side.
    g_ref / b_ref: (1, width) = gamma / beta tiled `groups` times.
    For groups > 1: rest = (S_ref (width, groups), ST_ref (groups, width), o_ref).
    For groups == 1: rest = (o_ref,).
    """
    x = x_ref[...].astype(jnp.float32)
    inv_d = jnp.float32(1.0 / d)

    if groups > 1:
        s_ref, st_ref, o_ref = rest
        hp = lax.Precision.HIGHEST  # keep f32 accuracy through the MXU
        S = s_ref[...]    # (width, groups) 0/1 segment selector
        ST = st_ref[...]  # (groups, width) broadcast-back matrix
        # Segment sums on the MXU (XLU/VPU stay free); groups MACs/element.
        sum1 = jnp.dot(x, S, preferred_element_type=jnp.float32, precision=hp)
        sum2 = jnp.dot(x * x, S, preferred_element_type=jnp.float32, precision=hp)
        mean_c = sum1 * inv_d                       # (row_tile, groups)
        var_c = sum2 * inv_d - mean_c * mean_c      # fused single-pass variance
        inv_c = lax.rsqrt(var_c + jnp.float32(EPS))  # compact: one rsqrt per row
        # Broadcast per-segment stats back to per-lane (exact: 0/1 matrix).
        mean = jnp.dot(mean_c, ST, preferred_element_type=jnp.float32, precision=hp)
        inv = jnp.dot(inv_c, ST, preferred_element_type=jnp.float32, precision=hp)
    else:
        (o_ref,) = rest
        sum1 = jnp.sum(x, axis=-1, keepdims=True)   # (row_tile, 1)
        sum2 = jnp.sum(x * x, axis=-1, keepdims=True)
        mean = sum1 * inv_d
        var = sum2 * inv_d - mean * mean
        inv = lax.rsqrt(var + jnp.float32(EPS))

    gamma = g_ref[...].astype(jnp.float32)
    beta = b_ref[...].astype(jnp.float32)
    scale = inv * gamma
    shift = beta - mean * scale
    o_ref[...] = (x * scale + shift).astype(o_ref.dtype)  # one FMA per element


@functools.partial(
    jax.jit, static_argnames=("target_f32_tile_bytes", "vmem_limit_bytes")
)
def layer_normalization(
    x, gamma, beta, *, target_f32_tile_bytes=2 << 20, vmem_limit_bytes=32 << 20
):
    """LayerNorm over the last dim of x (arbitrary leading dims); gamma/beta: (D,).

    target_f32_tile_bytes sizes the block from the f32 working set (the kernel
    upcasts to f32), so bf16 inputs do not silently double the VMEM footprint.
    2 MiB + a 32 MiB scoped-VMEM limit is safe on v5e/v6e/v7x; on v7x ~4 MiB
    recovers a few extra percent of the 3.2 TB/s roofline.
    """
    orig_shape = x.shape
    D = orig_shape[-1]
    rows = math.prod(orig_shape[:-1])
    itemsize = jnp.dtype(x.dtype).itemsize
    sublane = max(8, 32 // itemsize)  # 8 for f32, 16 for bf16

    # Lane-dense grouping: pack `groups` rows side by side so the block width
    # is a multiple of 128 lanes (unmasked vst, full vreg utilization).  Works
    # for any D < 128 whose lcm with 128 stays small (D=32, 48, 64, 96, ...).
    groups = 1
    if D < 128:
        w = math.lcm(D, 128)
        if w <= 1024:
            groups = w // D
    width = groups * D

    x2d = x.reshape(rows, D)
    if groups > 1 and rows % groups != 0:
        # Minimal pad (< groups rows); padded rows normalize to beta and are
        # sliced off afterwards.  No padding at all on the common aligned case.
        rows_pad = _round_up(rows, groups)
        x2d = jnp.pad(x2d, ((0, rows_pad - rows), (0, 0)))
    else:
        rows_pad = rows
    rows_g = rows_pad // groups
    slab = x2d.reshape(rows_g, width)  # free row-major reshape

    # Tile sizing from the f32 working set; ragged last block is masked by
    # Pallas (no pad to a multiple of row_tile).
    row_tile = max(sublane, target_f32_tile_bytes // (width * 4))
    row_tile = _round_up(row_tile, sublane)
    row_tile = min(row_tile, _round_up(rows_g, sublane))
    grid = pl.cdiv(rows_g, row_tile)

    g2d = jnp.tile(gamma, groups).reshape(1, width)
    b2d = jnp.tile(beta, groups).reshape(1, width)

    in_arrays = [slab, g2d, b2d]
    in_specs = [
        pl.BlockSpec((row_tile, width), lambda i: (i, 0)),
        # gamma/beta: grid-invariant blocks (constant index_map -> no re-DMA).
        pl.BlockSpec((1, width), lambda i: (0, 0)),
        pl.BlockSpec((1, width), lambda i: (0, 0)),
    ]
    if groups > 1:
        seg = jnp.arange(width, dtype=jnp.int32) // D
        S = (seg[:, None] == jnp.arange(groups, dtype=jnp.int32)[None, :]).astype(
            jnp.float32
        )                                   # (width, groups) 0/1 selector
        ST = jnp.transpose(S)               # (groups, width)
        in_arrays += [S, ST]
        in_specs += [
            pl.BlockSpec((width, groups), lambda i: (0, 0)),
            pl.BlockSpec((groups, width), lambda i: (0, 0)),
        ]

    mxu_flops = 8 * rows_g * width * groups if groups > 1 else 0
    cost = pl.CostEstimate(
        flops=8 * rows * D + mxu_flops,
        transcendentals=rows,  # one rsqrt per LayerNorm row (compact stats)
        bytes_accessed=2 * rows * D * itemsize
        + 2 * D * jnp.dtype(gamma.dtype).itemsize,
    )

    out_slab = pl.pallas_call(
        functools.partial(_layernorm_kernel, d=D, groups=groups),
        out_shape=jax.ShapeDtypeStruct(slab.shape, x.dtype),
        grid_spec=pltpu.PrefetchScalarGridSpec(
            num_scalar_prefetch=0,
            grid=(grid,),
            in_specs=in_specs,
            out_specs=pl.BlockSpec((row_tile, width), lambda i: (i, 0)),
        ),
        compiler_params=pltpu.CompilerParams(
            # Parallel grid axis lets v7x's two TensorCores split the tiles.
            dimension_semantics=("parallel",),
            vmem_limit_bytes=vmem_limit_bytes,
        ),
        cost_estimate=cost,
    )(*in_arrays)

    out2d = out_slab.reshape(rows_pad, D)
    if rows_pad != rows:
        out2d = out2d[:rows]
    return out2d.reshape(orig_shape)


# TODO(synk): the 'batch' (nn.BatchNorm1d) branch of the PyTorch module is not
# implemented; only the default 'layer' branch is reproduced here.


def _reference_layernorm(x, gamma, beta):
    x32 = x.astype(jnp.float32)
    mean = jnp.mean(x32, axis=-1, keepdims=True)
    var = jnp.mean((x32 - mean) ** 2, axis=-1, keepdims=True)
    y = (x32 - mean) * lax.rsqrt(var + EPS) * gamma + beta
    return y.astype(x.dtype)


if __name__ == "__main__":
    key = jax.random.PRNGKey(0)
    k1, k2, k3 = jax.random.split(key, 3)

    # Case 1: encoder-like config; D=32 exercises the lane-dense MXU
    # segment-sum path (groups=4 rows packed per 128-lane VMEM row).
    batch, seq, embed_dim = 2, 8, 32
    x = jax.random.normal(k1, (batch, seq, embed_dim), dtype=jnp.float32)
    gamma = 1.0 + 0.1 * jax.random.normal(k2, (embed_dim,), dtype=jnp.float32)
    beta = 0.1 * jax.random.normal(k3, (embed_dim,), dtype=jnp.float32)

    out = jax.block_until_ready(layer_normalization(x, gamma, beta))
    ref = _reference_layernorm(x, gamma, beta)
    assert out.shape == x.shape
    assert jnp.allclose(out, ref, atol=5e-5, rtol=5e-5), "mismatch (D=32 grouped)"

    # Case 2: D=128 (ungrouped lane-reduce path), row count not a multiple of
    # the tile -> exercises the ragged (masked) last block with no padding.
    x2 = jax.random.normal(k1, (2, 7, 128), dtype=jnp.float32)
    g2 = jnp.ones((128,), dtype=jnp.float32)  # nn.LayerNorm default init
    b2 = jnp.zeros((128,), dtype=jnp.float32)
    out2 = jax.block_until_ready(layer_normalization(x2, g2, b2))
    ref2 = _reference_layernorm(x2, g2, b2)
    assert jnp.allclose(out2, ref2, atol=5e-5, rtol=5e-5), "mismatch (D=128)"

    # Case 3: D=48 (does not divide 128) -> lcm grouping (groups=8, width=384)
    # plus a ragged row count that needs the minimal pad-to-groups path.
    x3 = jax.random.normal(k2, (2, 5, 48), dtype=jnp.float32)
    g3 = 1.0 + 0.05 * jax.random.normal(k3, (48,), dtype=jnp.float32)
    b3 = 0.05 * jax.random.normal(k1, (48,), dtype=jnp.float32)
    out3 = jax.block_until_ready(layer_normalization(x3, g3, b3))
    ref3 = _reference_layernorm(x3, g3, b3)
    assert jnp.allclose(out3, ref3, atol=5e-5, rtol=5e-5), "mismatch (D=48 lcm)"

    print("KERNEL_OK")
</pallas_src>

<mosaic_0001>
module attributes {stable_mosaic.version = 11 : i64} {
  func.func @_layernorm_kernel(%arg0: i32, %arg1: memref<8x128xf32, #tpu.memory_space<vmem>>, %arg2: memref<1x128xf32, #tpu.memory_space<vmem>>, %arg3: memref<1x128xf32, #tpu.memory_space<vmem>>, %arg4: memref<128x4xf32, #tpu.memory_space<vmem>>, %arg5: memref<4x128xf32, #tpu.memory_space<vmem>>, %arg6: memref<8x128xf32, #tpu.memory_space<vmem>>) attributes {dimension_semantics = [#tpu.dimension_semantics<parallel>], iteration_bounds = array<i64: 1>, scalar_prefetch = 0 : i64, scratch_operands = 0 : i64, tpu.core_type = #tpu.core_type<tc>, window_params = [{transform_indices = @transform_0, window_bounds = array<i64: 8, 128>}, {pipeline_mode = #tpu.pipeline_mode<synchronous>, transform_indices = @transform_1, window_bounds = array<i64: 1, 128>}, {pipeline_mode = #tpu.pipeline_mode<synchronous>, transform_indices = @transform_2, window_bounds = array<i64: 1, 128>}, {pipeline_mode = #tpu.pipeline_mode<synchronous>, transform_indices = @transform_3, window_bounds = array<i64: 128, 4>}, {pipeline_mode = #tpu.pipeline_mode<synchronous>, transform_indices = @transform_4, window_bounds = array<i64: 4, 128>}, {transform_indices = @transform_5, window_bounds = array<i64: 8, 128>}]} {
    %c0 = arith.constant 0 : index
    %c0_0 = arith.constant 0 : index
    %0 = vector.load %arg1[%c0, %c0_0] : memref<8x128xf32, #tpu.memory_space<vmem>>, vector<8x128xf32>
    %c0_1 = arith.constant 0 : index
    %c0_2 = arith.constant 0 : index
    %1 = vector.load %arg4[%c0_1, %c0_2] : memref<128x4xf32, #tpu.memory_space<vmem>>, vector<128x4xf32>
    %c0_3 = arith.constant 0 : index
    %c0_4 = arith.constant 0 : index
    %2 = vector.load %arg5[%c0_3, %c0_4] : memref<4x128xf32, #tpu.memory_space<vmem>>, vector<4x128xf32>
    %cst = arith.constant dense<0.000000e+00> : vector<8x4xf32>
    %3 = tpu.matmul %0, %1, %cst {dimension_numbers = #tpu.dot_dimension_numbers<[1], [0], [0], [1], [0, 0, 1, 1], [], []>, precision = #tpu.contract_precision<fp32>} : vector<8x128xf32>, vector<128x4xf32>, vector<8x4xf32> -> vector<8x4xf32>
    %4 = arith.mulf %0, %0 : vector<8x128xf32>
    %cst_5 = arith.constant dense<0.000000e+00> : vector<8x4xf32>
    %5 = tpu.matmul %4, %1, %cst_5 {dimension_numbers = #tpu.dot_dimension_numbers<[1], [0], [0], [1], [0, 0, 1, 1], [], []>, precision = #tpu.contract_precision<fp32>} : vector<8x128xf32>, vector<128x4xf32>, vector<8x4xf32> -> vector<8x4xf32>
    %cst_6 = arith.constant 3.125000e-02 : f32
    %6 = vector.broadcast %cst_6 : f32 to vector<8x4xf32>
    %7 = arith.mulf %3, %6 : vector<8x4xf32>
    %cst_7 = arith.constant 3.125000e-02 : f32
    %8 = vector.broadcast %cst_7 : f32 to vector<8x4xf32>
    %9 = arith.mulf %5, %8 : vector<8x4xf32>
    %10 = arith.mulf %7, %7 : vector<8x4xf32>
    %11 = arith.subf %9, %10 : vector<8x4xf32>
    %cst_8 = arith.constant 9.99999974E-6 : f32
    %12 = vector.broadcast %cst_8 : f32 to vector<8x4xf32>
    %13 = arith.addf %11, %12 : vector<8x4xf32>
    %14 = math.rsqrt %13 : vector<8x4xf32>
    %cst_9 = arith.constant dense<0.000000e+00> : vector<8x128xf32>
    %15 = tpu.matmul %7, %2, %cst_9 {dimension_numbers = #tpu.dot_dimension_numbers<[1], [0], [0], [1], [0, 0, 1, 1], [], []>, precision = #tpu.contract_precision<fp32>} : vector<8x4xf32>, vector<4x128xf32>, vector<8x128xf32> -> vector<8x128xf32>
    %cst_10 = arith.constant dense<0.000000e+00> : vector<8x128xf32>
    %16 = tpu.matmul %14, %2, %cst_10 {dimension_numbers = #tpu.dot_dimension_numbers<[1], [0], [0], [1], [0, 0, 1, 1], [], []>, precision = #tpu.contract_precision<fp32>} : vector<8x4xf32>, vector<4x128xf32>, vector<8x128xf32> -> vector<8x128xf32>
    %c0_11 = arith.constant 0 : index
    %c0_12 = arith.constant 0 : index
    %17 = vector.load %arg2[%c0_11, %c0_12] : memref<1x128xf32, #tpu.memory_space<vmem>>, vector<1x128xf32>
    %c0_13 = arith.constant 0 : index
    %c0_14 = arith.constant 0 : index
    %18 = vector.load %arg3[%c0_13, %c0_14] : memref<1x128xf32, #tpu.memory_space<vmem>>, vector<1x128xf32>
    %19 = vector.broadcast %17 : vector<1x128xf32> to vector<8x128xf32>
    %20 = arith.mulf %16, %19 : vector<8x128xf32>
    %21 = arith.mulf %15, %20 : vector<8x128xf32>
    %22 = vector.broadcast %18 : vector<1x128xf32> to vector<8x128xf32>
    %23 = arith.subf %22, %21 : vector<8x128xf32>
    %24 = arith.mulf %0, %20 : vector<8x128xf32>
    %25 = arith.addf %24, %23 : vector<8x128xf32>
    %c0_15 = arith.constant 0 : index
    %c0_16 = arith.constant 0 : index
    %26 = vector.load %arg6[%c0_15, %c0_16] : memref<8x128xf32, #tpu.memory_space<vmem>>, vector<8x128xf32>
    tpu.vector_store %arg6[%c0_15, %c0_16], %25 {strides = array<i32>} : memref<8x128xf32, #tpu.memory_space<vmem>>, vector<8x128xf32>,
    return
  }
  func.func @transform_0(%arg0: i32) -> (i32, i32) {
    %c0_i32 = arith.constant 0 : i32
    %c0_i32_0 = arith.constant 0 : i32
    return %arg0, %c0_i32 : i32, i32
  }
  func.func @transform_1(%arg0: i32) -> (i32, i32) {
    %c0_i32 = arith.constant 0 : i32
    %c0_i32_0 = arith.constant 0 : i32
    %c0_i32_1 = arith.constant 0 : i32
    return %c0_i32, %c0_i32_0 : i32, i32
  }
  func.func @transform_2(%arg0: i32) -> (i32, i32) {
    %c0_i32 = arith.constant 0 : i32
    %c0_i32_0 = arith.constant 0 : i32
    %c0_i32_1 = arith.constant 0 : i32
    return %c0_i32, %c0_i32_0 : i32, i32
  }
  func.func @transform_3(%arg0: i32) -> (i32, i32) {
    %c0_i32 = arith.constant 0 : i32
    %c0_i32_0 = arith.constant 0 : i32
    %c0_i32_1 = arith.constant 0 : i32
    return %c0_i32, %c0_i32_0 : i32, i32
  }
  func.func @transform_4(%arg0: i32) -> (i32, i32) {
    %c0_i32 = arith.constant 0 : i32
    %c0_i32_0 = arith.constant 0 : i32
    %c0_i32_1 = arith.constant 0 : i32
    return %c0_i32, %c0_i32_0 : i32, i32
  }
  func.func @transform_5(%arg0: i32) -> (i32, i32) {
    %c0_i32 = arith.constant 0 : i32
    %c0_i32_0 = arith.constant 0 : i32
    return %arg0, %c0_i32 : i32, i32
  }
}

</mosaic_0001>

<bundles_post_ra>
// kernel: tile.13
= control target key start
LH: loop header
LB: loop body
LE: loop exit
PB: predicated region body
PF: predicated region fallthrough
CT: control target
= control target key end

     0   :  { %s22_s0 = inlined_call_operand.vmem [shape: f32[32], index: 0, kind: input, shape index: {}]   ;;  %s23_s1 = inlined_call_operand.vmem [shape: f32[4,32], index: 1, kind: output, shape index: {}]  }
   0x1   :  { %v4_v0 = vld [vmem:[%s22_s0] ss:$0 sm:$0xff] }
   0x2   :  { %5 = vst [vmem:[%s23_s1] sm:$0xf] %v4_v0 }

// kernel: tile.14
= control target key start
LH: loop header
LB: loop body
LE: loop exit
PB: predicated region body
PF: predicated region fallthrough
CT: control target
= control target key end

     0   :  { %vm7_vm0 = vcmask 261120   ;;  %s37_s8 = smov 32   ;;  %s38_s9 = smov 64   ;;  %vm13_vm1 = vcmask 1048320   ;;  %vm19_vm2 = vcmask 785920   ;;  %vm25_vm3 = vcmask 523520   ;;  %s55_s0 = inlined_call_operand.vmem [shape: f32[4,32], index: 0, kind: input, shape index: {}]   ;;  %s56_s1 = inlined_call_operand.vmem [shape: f32[1,128], index: 1, kind: output, shape index: {}]  }
   0x1   :  { %v4_v0 = vld [vmem:[%s55_s0] sm:$0xf]  ;;  %s36_s0 = smov 96  }
   0x2   :  { %5 = vst [vmem:[#allocation1] sm:$0xf] %v4_v0 }
   0x9   :  { %v10_v1 = vld [vmem:[#allocation1 + $0x3] sm:$0x1]   ;;  %v22_v2 = vld [vmem:[#allocation1 + $0x1] sm:$0x1]   ;;  %v6_v3 = vld [vmem:[#allocation1] sm:$0x1]  }
   0xa   :  { %11 = vrot.lane.b32.xlu0 %v10_v1, %s36_s0  ;;  %23 = vrot.lane.b32.xlu1 %v22_v2, %s37_s8  ;;  %v16_v4 = vld [vmem:[#allocation1 + $0x2] sm:$0x1]   ;;  %8 = vst.msk [vmem:[#allocation0] sm:$0x1] %vm7_vm0, %v6_v3  }
   0xe   :  { %17 = vrot.lane.b32.xlu0 %v16_v4, %s38_s9 }
  0x7c   :  { %v12_v5 = vpop.permute.xlu0 %11   ;;  %v24_v6 = vpop.permute.xlu1 %23  }
  0x7d   :  { %14 = vst.msk [vmem:[#allocation0] sm:$0x1] %vm13_vm1, %v12_v5  }
  0x80   :  { %v18_v7 = vpop.permute.xlu0 %17  }
  0x81   :  { %20 = vst.msk [vmem:[#allocation0] sm:$0x1] %vm19_vm2, %v18_v7  }
  0x82   :  { %26 = vst.msk [vmem:[#allocation0] sm:$0x1] %vm25_vm3, %v24_v6  }
  0x89   :  { %v30_v8 = vld [vmem:[#allocation0] sm:$0x1] }
  0x8a   :  { %32 = vst [vmem:[%s56_s1] sm:$0x1] %v30_v8 }

// kernel: layer_normalization.1
= control target key start
LH: loop header
LB: loop body
LE: loop exit
PB: predicated region body
PF: predicated region fallthrough
CT: control target
= control target key end

     0   :  { %v3332_v3 = vmov 0.0|0.0   ;;  %vm3333_vm0 = vmmov 0   ;;  %v3334_v11 = vmov 0.0   ;;  %vm1331_vm1 = vcmask 1043456   ;;  %s3839_s0 = inlined_call_operand.vmem [shape: f32[4,128], index: 0, kind: input, shape index: {}]   ;;  %s3840_s1 = inlined_call_operand.vmem [shape: f32[1,128], index: 1, kind: input, shape index: {}]   ;;  %s3841_s2 = inlined_call_operand.vmem [shape: f32[1,128], index: 2, kind: input, shape index: {}]   ;;  %s3842_s3 = inlined_call_operand.vmem [shape: f32[128,4], index: 3, kind: input, shape index: {}]   ;;  %s3843_s4 = inlined_call_operand.vmem [shape: f32[4,128], index: 4, kind: input, shape index: {}]   ;;  %s3844_s5 = inlined_call_operand.vmem [shape: f32[4,128], index: 5, kind: output, shape index: {}]  }
   0x1   :  { %v21_v0 = vld [vmem:[%s3842_s3] sm:$0xff]  ;;  %v22_v1 = vld [vmem:[%s3842_s3 + $0x8] sm:$0xff]  ;;  %v23_v2 = vld [vmem:[%s3842_s3 + $0x10] sm:$0xff]  ;;  %2999 = vmatprep.subr.bf16.mxu0 %v3332_v3  ;;  %3143 = vmatprep.subr.bf16.mxu1 %v3332_v3  ;;  %vm1327_vm2 = vcmask 31744  }
   0x2   :  { %v39_v4 = vand.u32 4294901760, %v21_v0  ;;  %v42_v5 = vand.u32 4294901760, %v22_v1  ;;  %v3379_v6 = vld [vmem:[%s3842_s3 + $0x18] sm:$0xff]  ;;  %v45_v7 = vand.u32 4294901760, %v23_v2  ;;  %v3385_v9 = vld [vmem:[%s3842_s3 + $0x20] sm:$0xff]  ;;  %v3390_v10 = vld [vmem:[%s3842_s3 + $0x28] sm:$0xff]  ;;  %2551 = vmatprep.mubr.msk.f32.mxu0 %vm3333_vm0, %v3334_v11  ;;  %2761 = vmatprep.mubr.msk.f32.mxu1 %vm3333_vm0, %v3334_v11 }
   0x3   :  { %v48_v8 = vand.u32 4294901760, %v3379_v6  ;;  %v51_v14 = vand.u32 4294901760, %v3385_v9  ;;  %v54_v15 = vand.u32 4294901760, %v3390_v10  ;;  %v3409_v16 = vld [vmem:[%s3842_s3 + $0x30] sm:$0xff]  ;;  %v3414_v17 = vld [vmem:[%s3842_s3 + $0x38] sm:$0xff]  ;;  %v3419_v18 = vld [vmem:[%s3839_s0] sm:$0xff] }
   0x4   :  { %v3396_v12 = vpack.c.bf16 %v42_v5, %v39_v4  ;;  %v57_v20 = vand.u32 4294901760, %v3409_v16  ;;  %v60_v21 = vand.u32 4294901760, %v3414_v17  ;;  %v29_v22 = vld [vmem:[%s3842_s3 + $0x40] sm:$0xff]  ;;  %v30_v23 = vld [vmem:[%s3842_s3 + $0x48] sm:$0xff]  ;;  %v3436_v24 = vand.u32 4294901760, %v3419_v18  ;;  %v31_v26 = vld [vmem:[%s3842_s3 + $0x50] sm:$0xff] }
   0x5   :  { %v3400_v13 = vpack.c.bf16 %v48_v8, %v45_v7  ;;  %v3423_v19 = vpack.c.bf16 %v54_v15, %v51_v14  ;;  %v679_v25 = vmul.f32 %v3419_v18, %v3419_v18  ;;  %v32_v27 = vld [vmem:[%s3842_s3 + $0x58] sm:$0xff]  ;;  %v33_v28 = vld [vmem:[%s3842_s3 + $0x60] sm:$0xff]  ;;  %v63_v30 = vand.u32 4294901760, %v29_v22  ;;  %v34_v32 = vld [vmem:[%s3842_s3 + $0x68] sm:$0xff] }
   0x6   :  { %3001 = vmatpush3.bf16.msra.mxu0 %v3396_v12  ;;  %3145 = vmatpush3.bf16.msra.mxu1 %v3396_v12  ;;  %v3451_v29 = vpack.c.bf16 %v60_v21, %v57_v20  ;;  %v66_v31 = vand.u32 4294901760, %v30_v23  ;;  %v35_v33 = vld [vmem:[%s3842_s3 + $0x70] sm:$0xff]  ;;  %v36_v34 = vld [vmem:[%s3842_s3 + $0x78] sm:$0xff]  ;;  %v3462_v35 = vsub.f32 %v21_v0, %v39_v4  ;;  %v3468_v36 = vsub.f32 %v3419_v18, %v3436_v24 }
   0x7   :  { %3002 = vmatprep.subr.bf16.mxu0 %v3332_v3  ;;  %3146 = vmatprep.subr.bf16.mxu1 %v3332_v3  ;;  %v3470_v37 = vsub.f32 %v22_v1, %v42_v5  ;;  %v3472_v38 = vsub.f32 %v23_v2, %v45_v7  ;;  %v69_v39 = vand.u32 4294901760, %v31_v26  ;;  %v72_v40 = vand.u32 4294901760, %v32_v27 }
   0x8   :  { %v3474_v41 = vand.u32 4294901760, %v679_v25  ;;  %v75_v42 = vand.u32 4294901760, %v33_v28  ;;  %v78_v43 = vand.u32 4294901760, %v34_v32  ;;  %v81_v44 = vand.u32 4294901760, %v35_v33 }
   0x9   :  { %v84_v45 = vand.u32 4294901760, %v36_v34  ;;  %v3478_v46 = vpack.c.bf16 %v66_v31, %v63_v30  ;;  %v132_v47 = vand.u32 4294901760, %v3462_v35  ;;  %v3846_v48 = vand.u32 4294901760, %v3468_v36 }
   0xa   :  { %3004 = vmatpush3.bf16.msra.mxu0 %v3400_v13  ;;  %3148 = vmatpush3.bf16.msra.mxu1 %v3400_v13  ;;  %v139_v49 = vand.u32 4294901760, %v3470_v37  ;;  %v146_v50 = vand.u32 4294901760, %v3472_v38  ;;  %v3487_v51 = vsub.f32 %v3379_v6, %v48_v8  ;;  %v3490_v52 = vsub.f32 %v679_v25, %v3474_v41 }
   0xb   :  { %3005 = vmatprep.subr.bf16.mxu0 %v3332_v3  ;;  %3149 = vmatprep.subr.bf16.mxu1 %v3332_v3  ;;  %v3492_v53 = vpack.c.bf16 %v72_v40, %v69_v39  ;;  %v3494_v54 = vpack.c.bf16 %v78_v43, %v75_v42  ;;  %v3496_v55 = vpack.c.bf16 %v84_v45, %v81_v44 }
   0xc   :  { %v133_v56 = vsub.f32 %v3462_v35, %v132_v47  ;;  %v3502_v57 = vsub.f32 %v3385_v9, %v51_v14  ;;  %v3505_v58 = vsub.f32 %v3390_v10, %v54_v15  ;;  %v122_v59 = vsub.f32 %v3468_v36, %v3846_v48 }
   0xd   :  { %v140_v60 = vsub.f32 %v3470_v37, %v139_v49  ;;  %v3514_v61 = vsub.f32 %v3472_v38, %v146_v50  ;;  %v153_v62 = vand.u32 4294901760, %v3487_v51  ;;  %v3845_v63 = vand.u32 4294901760, %v3490_v52 }
   0xe   :  { %3007 = vmatpush3.bf16.msra.mxu0 %v3423_v19  ;;  %3151 = vmatpush3.bf16.msra.mxu1 %v3423_v19  ;;  %v3519_v0 = vsub.f32 %v3409_v16, %v57_v20  ;;  %v3522_v1 = vsub.f32 %v3414_v17, %v60_v21  ;;  %v3524_v2 = vsub.f32 %v29_v22, %v63_v30  ;;  %v160_v8 = vand.u32 4294901760, %v3502_v57 }
   0xf   :  { %3008 = vmatprep.subr.bf16.mxu0 %v3332_v3  ;;  %3152 = vmatprep.subr.bf16.mxu1 %v3332_v3  ;;  %v3526_v4 = vsub.f32 %v30_v23, %v66_v31  ;;  %v3528_v5 = vsub.f32 %v31_v26, %v69_v39  ;;  %v3530_v6 = vsub.f32 %v32_v27, %v72_v40  ;;  %v134_v15 = vand.u32 4294901760, %v133_v56 }
  0x10   :  { %v3532_v7 = vsub.f32 %v33_v28, %v75_v42  ;;  %v3537_v9 = vsub.f32 %v34_v32, %v78_v43  ;;  %v3539_v10 = vsub.f32 %v35_v33, %v81_v44  ;;  %v3541_v14 = vsub.f32 %v36_v34, %v84_v45 }
  0x11   :  { %v141_v16 = vand.u32 4294901760, %v140_v60  ;;  %v154_v17 = vsub.f32 %v3487_v51, %v153_v62  ;;  %v167_v20 = vand.u32 4294901760, %v3505_v58  ;;  %v764_v21 = vsub.f32 %v3490_v52, %v3845_v63 }
  0x12   :  { %3010 = vmatpush3.bf16.msra.mxu0 %v3451_v29  ;;  %3154 = vmatpush3.bf16.msra.mxu1 %v3451_v29  ;;  %v174_v22 = vand.u32 4294901760, %v3519_v0  ;;  %v181_v23 = vand.u32 4294901760, %v3522_v1  ;;  %v188_v25 = vand.u32 4294901760, %v3524_v2  ;;  %v195_v26 = vand.u32 4294901760, %v3526_v4 }
  0x13   :  { %3011 = vmatprep.subr.bf16.mxu0 %v3332_v3  ;;  %3155 = vmatprep.subr.bf16.mxu1 %v3332_v3  ;;  %v202_v27 = vand.u32 4294901760, %v3528_v5  ;;  %v209_v28 = vand.u32 4294901760, %v3530_v6  ;;  %v216_v30 = vand.u32 4294901760, %v3532_v7  ;;  %v223_v31 = vand.u32 4294901760, %v3537_v9 }
  0x14   :  { %v230_v32 = vand.u32 4294901760, %v3539_v10  ;;  %v3847_v33 = vand.u32 4294901760, %v3541_v14  ;;  %v3562_v34 = vpack.c.bf16 %v139_v49, %v132_v47  ;;  %v3566_v39 = vpack.c.bf16 %v153_v62, %v146_v50 }
  0x15   :  { %v3568_v40 = vpack.c.bf16 %v167_v20, %v160_v8  ;;  %v3570_v42 = vpack.c.bf16 %v181_v23, %v174_v22  ;;  %v3572_v43 = vpack.c.bf16 %v195_v26, %v188_v25  ;;  %v3574_v44 = vpack.c.bf16 %v209_v28, %v202_v27 }
  0x16   :  { %3013 = vmatpush3.bf16.msra.mxu0 %v3478_v46  ;;  %3157 = vmatpush3.bf16.msra.mxu1 %v3478_v46  ;;  %v3576_v45 = vpack.c.bf16 %v223_v31, %v216_v30  ;;  %v3582_v47 = vpack.c.bf16 %v3847_v33, %v230_v32  ;;  %v123_v49 = vand.u32 4294901760, %v122_v59  ;;  %v765_v56 = vand.u32 4294901760, %v764_v21 }
  0x17   :  { %3014 = vmatprep.subr.bf16.mxu0 %v3332_v3  ;;  %3158 = vmatprep.subr.bf16.mxu1 %v3332_v3  ;;  %v161_v50 = vsub.f32 %v3502_v57, %v160_v8  ;;  %v168_v60 = vsub.f32 %v3505_v58, %v167_v20  ;;  %v3024_v62 = vpack.c.bf16 %v141_v16, %v134_v15  ;;  %v148_v63 = vand.u32 4294901760, %v3514_v61 }
  0x18   :  { %v155_v48 = vand.u32 4294901760, %v154_v17  ;;  %v175_v20 = vsub.f32 %v3519_v0, %v174_v22  ;;  %v182_v33 = vsub.f32 %v3522_v1, %v181_v23  ;;  %v203_v17 = vsub.f32 %v3528_v5, %v202_v27 }
  0x19   :  { %v162_v59 = vand.u32 4294901760, %v161_v50  ;;  %v169_v21 = vand.u32 4294901760, %v168_v60  ;;  %v224_v27 = vsub.f32 %v3537_v9, %v223_v31 }
  0x1a   :  { %3016 = vmatpush3.bf16.msra.mxu0 %v3492_v53  ;;  %3160 = vmatpush3.bf16.msra.mxu1 %v3492_v53  ;;  %v3027_v8 = vpack.c.bf16 %v155_v48, %v148_v63  ;;  %v176_v15 = vand.u32 4294901760, %v175_v20  ;;  %v183_v16 = vand.u32 4294901760, %v182_v33  ;;  %v189_v48 = vsub.f32 %v3524_v2, %v188_v25 }
  0x1b   :  { %3017 = vmatprep.subr.bf16.mxu0 %v3332_v3  ;;  %3161 = vmatprep.subr.bf16.mxu1 %v3332_v3  ;;  %v3030_v61 = vpack.c.bf16 %v169_v21, %v162_v59  ;;  %v196_v63 = vsub.f32 %v3526_v4, %v195_v26  ;;  %v217_v25 = vsub.f32 %v3532_v7, %v216_v30  ;;  %v204_v33 = vand.u32 4294901760, %v203_v17 }
  0x1c   :  { %v3033_v22 = vpack.c.bf16 %v183_v16, %v176_v15  ;;  %v190_v23 = vand.u32 4294901760, %v189_v48  ;;  %v231_v30 = vsub.f32 %v3539_v10, %v230_v32  ;;  %v3848_v59 = vand.u32 4294901760, %v3541_v14 }
  0x1d   :  { %v218_v60 = vand.u32 4294901760, %v217_v25  ;;  %v3051_v15 = vpack.c.bf16 %v3487_v51, %v3472_v38  ;;  %v3060_v38 = vpack.c.bf16 %v3526_v4, %v3524_v2  ;;  %v3063_v51 = vpack.c.bf16 %v3530_v6, %v3528_v5 }
  0x1e   :  { %3019 = vmatpush3.bf16.msra.mxu0 %v3494_v54  ;;  %3163 = vmatpush3.bf16.msra.mxu1 %v3494_v54  ;;  %v238_v21 = vsub.f32 %v3541_v14, %v3848_v59 }
  0x1f   :  { %3020 = vmatprep.subr.bf16.mxu0 %v3332_v3  ;;  %3164 = vmatprep.subr.bf16.mxu1 %v3332_v3 }
  0x20   :  { %v239_v20 = vand.u32 4294901760, %v238_v21 }
  0x22   :  { %3022 = vmatpush3.bf16.msra.mxu0 %v3496_v55  ;;  %3166 = vmatpush3.bf16.msra.mxu1 %v3496_v55 }
  0x23   :  { %3023 = vmatprep.subr.bf16.mxu0 %v3332_v3  ;;  %3167 = vmatprep.subr.bf16.mxu1 %v3332_v3 }
  0x25   :  { %2552 = vmatmul.mubr.f32.vlgmr.msra.gmra.mrb[0].mxu0 %v123_v49  ;;  %2762 = vmatmul.mubr.f32.vlgmr.msra.gmra.mrb[0].mxu1 %v765_v56  ;;  %v197_v49 = vand.u32 4294901760, %v196_v63  ;;  %v210_v56 = vsub.f32 %v3530_v6, %v209_v28  ;;  %v2289_v63 = vld [vmem:[%s3840_s1] ss:$0 sm:$0xff] }
  0x26   :  { %3025 = vmatpush3.bf16.msra.mxu0 %v3024_v62  ;;  %3169 = vmatpush3.bf16.msra.mxu1 %v3024_v62  ;;  %v225_v62 = vand.u32 4294901760, %v224_v27 }
  0x27   :  { %3026 = vmatprep.subr.bf16.mxu0 %v3332_v3  ;;  %3170 = vmatprep.subr.bf16.mxu1 %v3332_v3  ;;  %v3036_v26 = vpack.c.bf16 %v197_v49, %v190_v23  ;;  %v211_v50 = vand.u32 4294901760, %v210_v56  ;;  %v2290_v49 = vld [vmem:[%s3841_s2] ss:$0 sm:$0xff] }
  0x28   :  { %2586 = vmatprep.mubr.msk.f32.mxu0 %vm3333_vm0, %v3334_v11  ;;  %2796 = vmatprep.mubr.msk.f32.mxu1 %vm3333_vm0, %v3334_v11  ;;  %v3042_v31 = vpack.c.bf16 %v225_v62, %v218_v60 }
  0x29   :  { %v3039_v28 = vpack.c.bf16 %v211_v50, %v204_v33 }
  0x2a   :  { %3028 = vmatpush3.bf16.msra.mxu0 %v3027_v8  ;;  %3172 = vmatpush3.bf16.msra.mxu1 %v3027_v8  ;;  %v232_v8 = vand.u32 4294901760, %v231_v30 }
  0x2b   :  { %3029 = vmatprep.subr.bf16.mxu0 %v3332_v3  ;;  %3173 = vmatprep.subr.bf16.mxu1 %v3332_v3 }
  0x2c   :  { %v3045_v32 = vpack.c.bf16 %v239_v20, %v232_v8 }
  0x2e   :  { %3031 = vmatpush3.bf16.msra.mxu0 %v3030_v61  ;;  %3175 = vmatpush3.bf16.msra.mxu1 %v3030_v61  ;;  %v3048_v61 = vpack.c.bf16 %v3470_v37, %v3462_v35  ;;  %v3054_v35 = vpack.c.bf16 %v3505_v58, %v3502_v57  ;;  %v3057_v37 = vpack.c.bf16 %v3522_v1, %v3519_v0  ;;  %v3849_v0 = vand.u32 4294901760, %v3468_v36 }
  0x2f   :  { %3032 = vmatprep.subr.bf16.mxu0 %v3332_v3  ;;  %3176 = vmatprep.subr.bf16.mxu1 %v3332_v3  ;;  %v3066_v57 = vpack.c.bf16 %v3537_v9, %v3532_v7  ;;  %v3069_v58 = vpack.c.bf16 %v3541_v14, %v3539_v10  ;;  %v3850_v1 = vand.u32 4294901760, %v3490_v52 }
  0x32   :  { %3034 = vmatpush3.bf16.msra.mxu0 %v3033_v22  ;;  %3178 = vmatpush3.bf16.msra.mxu1 %v3033_v22 }
  0x33   :  { %3035 = vmatprep.subr.bf16.mxu0 %v3332_v3  ;;  %3179 = vmatprep.subr.bf16.mxu1 %v3332_v3 }
  0x36   :  { %3037 = vmatpush3.bf16.msra.mxu0 %v3036_v26  ;;  %3181 = vmatpush3.bf16.msra.mxu1 %v3036_v26 }
  0x37   :  { %3038 = vmatprep.subr.bf16.mxu0 %v3332_v3  ;;  %3182 = vmatprep.subr.bf16.mxu1 %v3332_v3 }
  0x3a   :  { %3040 = vmatpush3.bf16.msra.mxu0 %v3039_v28  ;;  %3184 = vmatpush3.bf16.msra.mxu1 %v3039_v28 }
  0x3b   :  { %3041 = vmatprep.subr.bf16.mxu0 %v3332_v3  ;;  %3185 = vmatprep.subr.bf16.mxu1 %v3332_v3 }
  0x3e   :  { %3043 = vmatpush3.bf16.msra.mxu0 %v3042_v31  ;;  %3187 = vmatpush3.bf16.msra.mxu1 %v3042_v31 }
  0x3f   :  { %3044 = vmatprep.subr.bf16.mxu0 %v3332_v3  ;;  %3188 = vmatprep.subr.bf16.mxu1 %v3332_v3 }
  0x42   :  { %3046 = vmatpush3.bf16.msra.mxu0 %v3045_v32  ;;  %3190 = vmatpush3.bf16.msra.mxu1 %v3045_v32 }
  0x43   :  { %3047 = vmatprep.subr.bf16.mxu0 %v3332_v3  ;;  %3191 = vmatprep.subr.bf16.mxu1 %v3332_v3 }
  0x45   :  { %2587 = vmatmul.mubr.f32.vlgmr.msra.gmra.mrb[0].mxu0 %v3436_v24  ;;  %2797 = vmatmul.mubr.f32.vlgmr.msra.gmra.mrb[0].mxu1 %v3474_v41 }
  0x46   :  { %3049 = vmatpush3.bf16.msra.mxu0 %v3048_v61  ;;  %3193 = vmatpush3.bf16.msra.mxu1 %v3048_v61 }
  0x47   :  { %3050 = vmatprep.subr.bf16.mxu0 %v3332_v3  ;;  %3194 = vmatprep.subr.bf16.mxu1 %v3332_v3 }
  0x48   :  { %2621 = vmatprep.mubr.msk.f32.mxu0 %vm3333_vm0, %v3334_v11  ;;  %2831 = vmatprep.mubr.msk.f32.mxu1 %vm3333_vm0, %v3334_v11 }
  0x4a   :  { %3052 = vmatpush3.bf16.msra.mxu0 %v3051_v15  ;;  %3196 = vmatpush3.bf16.msra.mxu1 %v3051_v15 }
  0x4b   :  { %3053 = vmatprep.subr.bf16.mxu0 %v3332_v3  ;;  %3197 = vmatprep.subr.bf16.mxu1 %v3332_v3 }
  0x4e   :  { %3055 = vmatpush3.bf16.msra.mxu0 %v3054_v35  ;;  %3199 = vmatpush3.bf16.msra.mxu1 %v3054_v35 }
  0x4f   :  { %3056 = vmatprep.subr.bf16.mxu0 %v3332_v3  ;;  %3200 = vmatprep.subr.bf16.mxu1 %v3332_v3 }
  0x52   :  { %3058 = vmatpush3.bf16.msra.mxu0 %v3057_v37  ;;  %3202 = vmatpush3.bf16.msra.mxu1 %v3057_v37 }
  0x53   :  { %3059 = vmatprep.subr.bf16.mxu0 %v3332_v3  ;;  %3203 = vmatprep.subr.bf16.mxu1 %v3332_v3 }
  0x56   :  { %3061 = vmatpush3.bf16.msra.mxu0 %v3060_v38  ;;  %3205 = vmatpush3.bf16.msra.mxu1 %v3060_v38 }
  0x57   :  { %3062 = vmatprep.subr.bf16.mxu0 %v3332_v3  ;;  %3206 = vmatprep.subr.bf16.mxu1 %v3332_v3 }
  0x5a   :  { %3064 = vmatpush3.bf16.msra.mxu0 %v3063_v51  ;;  %3208 = vmatpush3.bf16.msra.mxu1 %v3063_v51 }
  0x5b   :  { %3065 = vmatprep.subr.bf16.mxu0 %v3332_v3  ;;  %3209 = vmatprep.subr.bf16.mxu1 %v3332_v3 }
  0x5e   :  { %3067 = vmatpush3.bf16.msra.mxu0 %v3066_v57  ;;  %3211 = vmatpush3.bf16.msra.mxu1 %v3066_v57 }
  0x5f   :  { %3068 = vmatprep.subr.bf16.mxu0 %v3332_v3  ;;  %3212 = vmatprep.subr.bf16.mxu1 %v3332_v3 }
  0x62   :  { %3070 = vmatpush3.bf16.msra.mxu0 %v3069_v58  ;;  %3214 = vmatpush3.bf16.msra.mxu1 %v3069_v58 }
  0x63   :  { %3071 = vmatprep.subr.bf16.mxu0 %v3332_v3  ;;  %3215 = vmatprep.subr.bf16.mxu1 %v3332_v3 }
  0x65   :  { %2622 = vmatmul.mubr.f32.vlgmr.msra.gmra.mrb[0].mxu0 %v3468_v36  ;;  %2832 = vmatmul.mubr.f32.vlgmr.msra.gmra.mrb[0].mxu1 %v3490_v52 }
  0x66   :  { %3073 = vmatpush3.bf16.msra.mxu0 %v3396_v12  ;;  %3217 = vmatpush3.bf16.msra.mxu1 %v3396_v12 }
  0x67   :  { %3074 = vmatprep.subr.bf16.mxu0 %v3332_v3  ;;  %3218 = vmatprep.subr.bf16.mxu1 %v3332_v3 }
  0x68   :  { %2656 = vmatprep.mubr.msk.f32.mxu0 %vm3333_vm0, %v3334_v11  ;;  %2866 = vmatprep.mubr.msk.f32.mxu1 %vm3333_vm0, %v3334_v11 }
  0x6a   :  { %3076 = vmatpush3.bf16.msra.mxu0 %v3400_v13  ;;  %3220 = vmatpush3.bf16.msra.mxu1 %v3400_v13 }
  0x6b   :  { %3077 = vmatprep.subr.bf16.mxu0 %v3332_v3  ;;  %3221 = vmatprep.subr.bf16.mxu1 %v3332_v3 }
  0x6e   :  { %3079 = vmatpush3.bf16.msra.mxu0 %v3423_v19  ;;  %3223 = vmatpush3.bf16.msra.mxu1 %v3423_v19 }
  0x6f   :  { %3080 = vmatprep.subr.bf16.mxu0 %v3332_v3  ;;  %3224 = vmatprep.subr.bf16.mxu1 %v3332_v3 }
  0x72   :  { %3082 = vmatpush3.bf16.msra.mxu0 %v3451_v29  ;;  %3226 = vmatpush3.bf16.msra.mxu1 %v3451_v29 }
  0x73   :  { %3083 = vmatprep.subr.bf16.mxu0 %v3332_v3  ;;  %3227 = vmatprep.subr.bf16.mxu1 %v3332_v3 }
  0x76   :  { %3085 = vmatpush3.bf16.msra.mxu0 %v3478_v46  ;;  %3229 = vmatpush3.bf16.msra.mxu1 %v3478_v46 }
  0x77   :  { %3086 = vmatprep.subr.bf16.mxu0 %v3332_v3  ;;  %3230 = vmatprep.subr.bf16.mxu1 %v3332_v3 }
  0x7a   :  { %3088 = vmatpush3.bf16.msra.mxu0 %v3492_v53  ;;  %3232 = vmatpush3.bf16.msra.mxu1 %v3492_v53 }
  0x7b   :  { %3089 = vmatprep.subr.bf16.mxu0 %v3332_v3  ;;  %3233 = vmatprep.subr.bf16.mxu1 %v3332_v3 }
  0x7e   :  { %3091 = vmatpush3.bf16.msra.mxu0 %v3494_v54  ;;  %3235 = vmatpush3.bf16.msra.mxu1 %v3494_v54 }
  0x7f   :  { %3092 = vmatprep.subr.bf16.mxu0 %v3332_v3  ;;  %3236 = vmatprep.subr.bf16.mxu1 %v3332_v3 }
  0x82   :  { %3094 = vmatpush3.bf16.msra.mxu0 %v3496_v55  ;;  %3238 = vmatpush3.bf16.msra.mxu1 %v3496_v55 }
  0x83   :  { %3095 = vmatprep.subr.bf16.mxu0 %v3332_v3  ;;  %3239 = vmatprep.subr.bf16.mxu1 %v3332_v3 }
  0x85   :  { %2657 = vmatmul.mubr.f32.vlgmr.msra.gmra.mrb[0].mxu0 %v3849_v0  ;;  %2867 = vmatmul.mubr.f32.vlgmr.msra.gmra.mrb[0].mxu1 %v3850_v1 }
  0x86   :  { %3097 = vmatpush3.bf16.msra.mxu0 %v3562_v34  ;;  %3241 = vmatpush3.bf16.msra.mxu1 %v3562_v34 }
  0x87   :  { %3098 = vmatprep.subr.bf16.mxu0 %v3332_v3  ;;  %3242 = vmatprep.subr.bf16.mxu1 %v3332_v3 }
  0x88   :  { %2691 = vmatprep.mubr.msk.f32.mxu0 %vm3333_vm0, %v3334_v11  ;;  %2901 = vmatprep.mubr.msk.f32.mxu1 %vm3333_vm0, %v3334_v11 }
  0x8a   :  { %3100 = vmatpush3.bf16.msra.mxu0 %v3566_v39  ;;  %3244 = vmatpush3.bf16.msra.mxu1 %v3566_v39 }
  0x8b   :  { %3101 = vmatprep.subr.bf16.mxu0 %v3332_v3  ;;  %3245 = vmatprep.subr.bf16.mxu1 %v3332_v3 }
  0x8e   :  { %3103 = vmatpush3.bf16.msra.mxu0 %v3568_v40  ;;  %3247 = vmatpush3.bf16.msra.mxu1 %v3568_v40 }
  0x8f   :  { %3104 = vmatprep.subr.bf16.mxu0 %v3332_v3  ;;  %3248 = vmatprep.subr.bf16.mxu1 %v3332_v3 }
  0x92   :  { %3106 = vmatpush3.bf16.msra.mxu0 %v3570_v42  ;;  %3250 = vmatpush3.bf16.msra.mxu1 %v3570_v42 }
  0x93   :  { %3107 = vmatprep.subr.bf16.mxu0 %v3332_v3  ;;  %3251 = vmatprep.subr.bf16.mxu1 %v3332_v3 }
  0x96   :  { %3109 = vmatpush3.bf16.msra.mxu0 %v3572_v43  ;;  %3253 = vmatpush3.bf16.msra.mxu1 %v3572_v43 }
  0x97   :  { %3110 = vmatprep.subr.bf16.mxu0 %v3332_v3  ;;  %3254 = vmatprep.subr.bf16.mxu1 %v3332_v3 }
  0x9a   :  { %3112 = vmatpush3.bf16.msra.mxu0 %v3574_v44  ;;  %3256 = vmatpush3.bf16.msra.mxu1 %v3574_v44 }
  0x9b   :  { %3113 = vmatprep.subr.bf16.mxu0 %v3332_v3  ;;  %3257 = vmatprep.subr.bf16.mxu1 %v3332_v3 }
  0x9e   :  { %3115 = vmatpush3.bf16.msra.mxu0 %v3576_v45  ;;  %3259 = vmatpush3.bf16.msra.mxu1 %v3576_v45 }
  0x9f   :  { %3116 = vmatprep.subr.bf16.mxu0 %v3332_v3  ;;  %3260 = vmatprep.subr.bf16.mxu1 %v3332_v3 }
  0xa2   :  { %3118 = vmatpush3.bf16.msra.mxu0 %v3582_v47  ;;  %3262 = vmatpush3.bf16.msra.mxu1 %v3582_v47 }
  0xa3   :  { %3119 = vmatprep.subr.bf16.mxu0 %v3332_v3  ;;  %3263 = vmatprep.subr.bf16.mxu1 %v3332_v3 }
  0xa5   :  { %2692 = vmatmul.mubr.f32.vlgmr.msra.gmra.mrb[0].mxu0 %v3436_v24  ;;  %2902 = vmatmul.mubr.f32.vlgmr.msra.gmra.mrb[0].mxu1 %v3474_v41 }
  0xa6   :  { %3121 = vmatpush3.bf16.msra.mxu0 %v3396_v12  ;;  %3265 = vmatpush3.bf16.msra.mxu1 %v3396_v12 }
  0xa7   :  { %3122 = vmatprep.subr.bf16.mxu0 %v3332_v3  ;;  %3266 = vmatprep.subr.bf16.mxu1 %v3332_v3 }
  0xa8   :  { %2726 = vmatprep.mubr.msk.f32.mxu0 %vm3333_vm0, %v3334_v11  ;;  %2936 = vmatprep.mubr.msk.f32.mxu1 %vm3333_vm0, %v3334_v11 }
  0xaa   :  { %3124 = vmatpush3.bf16.msra.mxu0 %v3400_v13  ;;  %3268 = vmatpush3.bf16.msra.mxu1 %v3400_v13 }
  0xab   :  { %3125 = vmatprep.subr.bf16.mxu0 %v3332_v3  ;;  %3269 = vmatprep.subr.bf16.mxu1 %v3332_v3 }
  0xae   :  { %3127 = vmatpush3.bf16.msra.mxu0 %v3423_v19  ;;  %3271 = vmatpush3.bf16.msra.mxu1 %v3423_v19 }
  0xaf   :  { %3128 = vmatprep.subr.bf16.mxu0 %v3332_v3  ;;  %3272 = vmatprep.subr.bf16.mxu1 %v3332_v3 }
  0xb2   :  { %3130 = vmatpush3.bf16.msra.mxu0 %v3451_v29  ;;  %3274 = vmatpush3.bf16.msra.mxu1 %v3451_v29 }
  0xb3   :  { %3131 = vmatprep.subr.bf16.mxu0 %v3332_v3  ;;  %3275 = vmatprep.subr.bf16.mxu1 %v3332_v3 }
  0xb6   :  { %3133 = vmatpush3.bf16.msra.mxu0 %v3478_v46  ;;  %3277 = vmatpush3.bf16.msra.mxu1 %v3478_v46 }
  0xb7   :  { %3134 = vmatprep.subr.bf16.mxu0 %v3332_v3  ;;  %3278 = vmatprep.subr.bf16.mxu1 %v3332_v3 }
  0xba   :  { %3136 = vmatpush3.bf16.msra.mxu0 %v3492_v53  ;;  %3280 = vmatpush3.bf16.msra.mxu1 %v3492_v53 }
  0xbb   :  { %3137 = vmatprep.subr.bf16.mxu0 %v3332_v3  ;;  %3281 = vmatprep.subr.bf16.mxu1 %v3332_v3 }
  0xbe   :  { %3139 = vmatpush3.bf16.msra.mxu0 %v3494_v54  ;;  %3283 = vmatpush3.bf16.msra.mxu1 %v3494_v54 }
  0xbf   :  { %3140 = vmatprep.subr.bf16.mxu0 %v3332_v3  ;;  %3284 = vmatprep.subr.bf16.mxu1 %v3332_v3  ;;  %v37_v3 = vld [vmem:[%s3843_s4] sm:$0xf] }
  0xc0   :  { %v1333_v12 = vsel %vm1331_vm1, %v37_v3, 0 }
  0xc1   :  { %v3788_v13 = vand.u32 4294901760, %v1333_v12 }
  0xc2   :  { %3142 = vmatpush3.bf16.msra.mxu0 %v3496_v55  ;;  %3286 = vmatpush3.bf16.msra.mxu1 %v3496_v55 }
  0xc3   :  { %2939 = vmatprep.subr.mxu0 %v3334_v11  ;;  %2969 = vmatprep.subr.mxu1 %v3334_v11  ;;  %v1413_v19 = vsub.f32 %v1333_v12, %v3788_v13 }
  0xc5   :  { %2727 = vmatmul.mubr.f32.vlgmr.msra.gmra.mrb[0].mxu0 %v3436_v24  ;;  %2937 = vmatmul.mubr.f32.vlgmr.msra.gmra.mrb[0].mxu1 %v3474_v41  ;;  %v1414_v55 = vand.u32 4294901760, %v1413_v19 }
  0xc6   :  { %2941 = vmatprep.mubr.msk.f32.mxu0 %vm3333_vm0, %v3334_v11  ;;  %2971 = vmatprep.mubr.msk.f32.mxu1 %vm3333_vm0, %v3334_v11 }
  0xc7   :  { %2940 = vmatpush3.msra.mxu0 %v3788_v13  ;;  %2970 = vmatpush3.msra.mxu1 %v3788_v13  ;;  %v1415_v7 = vsub.f32 %v1413_v19, %v1414_v55 }
  0xc8   :  { %2944 = vmatprep.subr.mxu0 %v3334_v11  ;;  %2974 = vmatprep.subr.mxu1 %v3334_v11 }
  0xc9   :  { %v1416_v14 = vand.u32 4294901760, %v1415_v7 }
 0x198   :  { %v675_v24 = vpop.f32.mrb[0].mxu0  ;;  %v1317_v29 = vpop.f32.mrb[0].mxu1 }
 0x199   :  { %v1321_v36 = vmul.f32 0.03125, %v675_v24  ;;  %v2728_v41 = vpop.f32.mrb[1].mxu0  ;;  %v2938_v46 = vpop.f32.mrb[1].mxu1  ;;  %v1322_v54 = vmul.f32 0.03125, %v1317_v29 }
 0x19b   :  { %v1323_v52 = vmul.f32 %v1321_v36, %v1321_v36  ;;  %v1329_v53 = vsel %vm1327_vm2, %v1321_v36, 0 }
 0x19c   :  { %v1401_v2 = vand.u32 4294901760, %v1329_v53 }
 0x19d   :  { %v1324_v4 = vsub.f32 %v1322_v54, %v1323_v52 }
 0x19e   :  { %v1402_v5 = vsub.f32 %v1329_v53, %v1401_v2 }
 0x19f   :  { %v1325_v6 = vadd.f32 1e-05, %v1324_v4 }
 0x1a0   :  { %v1403_v9 = vand.u32 4294901760, %v1402_v5 }
 0x1a1   :  { %3330 = vrsqrt.f32 %v1325_v6 }
 0x1a2   :  { %v1404_v10 = vsub.f32 %v1402_v5, %v1403_v9 }
 0x1a4   :  { %v1405_v34 = vand.u32 4294901760, %v1404_v10 }
 0x1a6   :  { %2942 = vmatmul.mubr.f32.vlgmr.msra.gmra.mrb[2].mxu0 %v1405_v34 }
 0x1a7   :  { %2945 = vmatpush3.msra.mxu0 %v1416_v14  ;;  %2946 = vmatprep.mubr.msk.f32.mxu0 %vm3333_vm0, %v3334_v11 }
 0x1a8   :  { %2949 = vmatprep.subr.mxu0 %v3334_v11 }
 0x1ab   :  { %v3331_v39 = vpop.eup %3330 }
 0x1ac   :  { %v1782_v40 = vsel %vm1327_vm2, %v3331_v39, 0 }
 0x1ad   :  { %v1850_v42 = vand.u32 4294901760, %v1782_v40 }
 0x1ae   :  { %2947 = vmatmul.mubr.f32.vlgmr.msra.gmra.mrb[2].mxu0 %v1401_v2 }
 0x1af   :  { %2950 = vmatpush3.msra.mxu0 %v1413_v19  ;;  %2951 = vmatprep.mubr.msk.f32.mxu0 %vm3333_vm0, %v3334_v11  ;;  %v1851_v43 = vsub.f32 %v1782_v40, %v1850_v42 }
 0x1b0   :  { %2954 = vmatprep.subr.mxu0 %v3334_v11 }
 0x1b1   :  { %v1852_v44 = vand.u32 4294901760, %v1851_v43 }
 0x1b3   :  { %v1853_v45 = vsub.f32 %v1851_v43, %v1852_v44 }
 0x1b5   :  { %v1854_v47 = vand.u32 4294901760, %v1853_v45 }
 0x1b6   :  { %2952 = vmatmul.mubr.f32.vlgmr.msra.gmra.mrb[2].mxu0 %v1402_v5 }
 0x1b7   :  { %2972 = vmatmul.mubr.f32.vlgmr.msra.gmra.mrb[2].mxu1 %v1854_v47  ;;  %2955 = vmatpush3.msra.mxu0 %v3788_v13 }
 0x1b8   :  { %2975 = vmatpush3.msra.mxu1 %v1416_v14  ;;  %2956 = vmatprep.mubr.msk.f32.mxu0 %vm3333_vm0, %v3334_v11 }
 0x1b9   :  { %2976 = vmatprep.mubr.msk.f32.mxu1 %vm3333_vm0, %v3334_v11  ;;  %2979 = vmatprep.subr.mxu1 %v3334_v11 }
 0x1ba   :  { %2959 = vmatprep.subr.mxu0 %v3334_v11 }
 0x1be   :  { %2957 = vmatmul.mubr.f32.vlgmr.msra.gmra.mrb[2].mxu0 %v1403_v9 }
 0x1bf   :  { %2977 = vmatmul.mubr.f32.vlgmr.msra.gmra.mrb[2].mxu1 %v1850_v42  ;;  %2960 = vmatpush3.msra.mxu0 %v1414_v55 }
 0x1c0   :  { %2980 = vmatpush3.msra.mxu1 %v1413_v19  ;;  %2961 = vmatprep.mubr.msk.f32.mxu0 %vm3333_vm0, %v3334_v11 }
 0x1c1   :  { %2981 = vmatprep.mubr.msk.f32.mxu1 %vm3333_vm0, %v3334_v11  ;;  %2984 = vmatprep.subr.mxu1 %v3334_v11 }
 0x1c2   :  { %2964 = vmatprep.subr.mxu0 %v3334_v11 }
 0x1c6   :  { %2962 = vmatmul.mubr.f32.vlgmr.msra.gmra.mrb[2].mxu0 %v1401_v2 }
 0x1c7   :  { %2982 = vmatmul.mubr.f32.vlgmr.msra.gmra.mrb[2].mxu1 %v1851_v43  ;;  %2965 = vmatpush3.msra.mxu0 %v3788_v13 }
 0x1c8   :  { %2985 = vmatpush3.msra.mxu1 %v3788_v13  ;;  %2966 = vmatprep.mubr.msk.f32.mxu0 %vm3333_vm0, %v3334_v11 }
 0x1c9   :  { %2986 = vmatprep.mubr.msk.f32.mxu1 %vm3333_vm0, %v3334_v11  ;;  %2989 = vmatprep.subr.mxu1 %v3334_v11 }
 0x1ce   :  { %2967 = vmatmul.mubr.f32.vlgmr.msra.gmra.mrb[2].mxu0 %v1401_v2 }
 0x1cf   :  { %2987 = vmatmul.mubr.f32.vlgmr.msra.gmra.mrb[2].mxu1 %v1852_v44 }
 0x1d0   :  { %2990 = vmatpush3.msra.mxu1 %v1414_v55  ;;  %2991 = vmatprep.mubr.msk.f32.mxu1 %vm3333_vm0, %v3334_v11 }
 0x1d1   :  { %2994 = vmatprep.subr.mxu1 %v3334_v11 }
 0x1d7   :  { %2992 = vmatmul.mubr.f32.vlgmr.msra.gmra.mrb[2].mxu1 %v1850_v42 }
 0x1d8   :  { %2995 = vmatpush3.msra.mxu1 %v3788_v13  ;;  %2996 = vmatprep.mubr.msk.f32.mxu1 %vm3333_vm0, %v3334_v11 }
 0x1df   :  { %2997 = vmatmul.mubr.f32.vlgmr.msra.gmra.mrb[2].mxu1 %v1850_v42 }
 0x2a1   :  { %v1777_v16 = vpop.f32.mrb[2].mxu0 }
 0x2a2   :  { %v2968_v48 = vpop.f32.mrb[3].mxu0 }
 0x2b2   :  { %v2226_v17 = vpop.f32.mrb[2].mxu1 }
 0x2b3   :  { %v2238_v22 = vmul.f32 %v2289_v63, %v2226_v17  ;;  %v2998_v23 = vpop.f32.mrb[3].mxu1 }
 0x2b5   :  { %v2239_v56 = vmul.f32 %v2238_v22, %v1777_v16  ;;  %v2247_v26 = vmul.f32 %v2238_v22, %v3419_v18 }
 0x2b7   :  { %v2246_v25 = vsub.f32 %v2290_v49, %v2239_v56 }
 0x2b9   :  { %v2248_v33 = vadd.f32 %v2247_v26, %v2246_v25 }
 0x2bb   :  { %2249 = vst [vmem:[#allocation2] sm:$0xff] %v2248_v33 }
 0x2c2   :  { %v2267_v11 = vld [vmem:[#allocation2] sm:$0xf] }
 0x2c3   :  { %2268 = vst [vmem:[%s3844_s5] sm:$0xf] %v2267_v11 }

</bundles_post_ra>
